<compile_context>
chip_gen: v5e
topology: v5e:2x2
jax: 0.10.0
libtpu: 0.0.40
codegen_flags: <defaults>
</compile_context>

<pallas_src>
import functools

import jax
import jax.numpy as jnp
from jax.experimental import pallas as pl
from jax.experimental.pallas import tpu as pltpu


def _round_up(x, m):
    return ((x + m - 1) // m) * m


def _pick_tile_h(H, W, lanes_in, lanes_out, budget_bytes=6 << 20):
    """Largest divisor of H whose (input + output) single-buffer tile fits the
    VMEM budget; prefer tiles giving >= 2 row tiles per image (pipeline depth,
    v7x megacore load balance)."""
    divisors = [d for d in range(1, H + 1) if H % d == 0]
    fitting = [d for d in divisors
               if d * W * (lanes_in + lanes_out) * 4 <= budget_bytes]
    if not fitting:
        return 1
    preferred = [d for d in fitting if H // d >= 2]
    return max(preferred) if preferred else max(fitting)


def _matmul_bias_relu_kernel(x_ref, w_ref, b_ref, o_ref, *, TH, W, KKCp, Coutp):
    # x_ref : (1, TH, W, KKCp)   lane-dense im2col rows for one (image, row-tile)
    # w_ref : (KKCp, Coutp)      taps flattened into the contraction, BN scale folded
    # b_ref : (1, Coutp)         folded BN bias
    # o_ref : (1, TH, W, Coutp)  lane-dense output tile
    x = x_ref[0].reshape(TH * W, KKCp)          # layout-preserving (lane dim unchanged)
    acc = jnp.dot(x, w_ref[...],                # single fat MXU matmul
                  preferred_element_type=jnp.float32)
    y = jnp.maximum(acc + b_ref[...], 0.0)      # bias + ReLU epilogue, f32
    o_ref[0] = y.reshape(TH, W, Coutp).astype(o_ref.dtype)


def conv_bn_relu_2d(x_nchw, weight, gamma, beta, running_mean, running_var,
                    eps=1e-5, compute_dtype=jnp.float32):
    """Forward pass of ConvBnReLU2D (eval-mode BN).

    x_nchw : (N, Cin, H, W)    float32
    weight : (Cout, Cin, K, K) float32 (PyTorch conv weight layout)
    returns: (N, Cout, H, W)   float32
    """
    N, Cin, H, W = x_nchw.shape
    Cout, Cin_w, K, K2 = weight.shape
    assert Cin == Cin_w and K == K2 and K % 2 == 1
    pad = (K - 1) // 2

    # ---- wrapper glue (plain JAX; XLA fuses it around the pallas_call) ----
    # NCHW -> NHWC, zero-pad spatially, fold the K*K taps into the channel axis.
    x_nhwc = jnp.transpose(x_nchw, (0, 2, 3, 1))
    x_padded = jnp.pad(x_nhwc, ((0, 0), (pad, pad), (pad, pad), (0, 0)))
    cols = [x_padded[:, dy:dy + H, dx:dx + W, :]
            for dy in range(K) for dx in range(K)]
    x_col = jnp.concatenate(cols, axis=-1)               # (N, H, W, K*K*Cin), tap-major

    KKC = K * K * Cin
    KKCp = _round_up(KKC, 128)        # lane-dense contraction
    Coutp = _round_up(Cout, 128)      # lane-dense output (biggest measured lever)

    x_col = jnp.pad(x_col, ((0, 0), (0, 0), (0, 0), (0, KKCp - KKC)))
    x_col = x_col.astype(compute_dtype)

    # weight (Cout, Cin, K, K) -> (K, K, Cin, Cout) -> (K*K*Cin, Cout); fold BN scale.
    scale = (gamma / jnp.sqrt(running_var + eps)).astype(jnp.float32)   # (Cout,)
    bias = (beta - running_mean * scale).astype(jnp.float32)            # (Cout,)
    w_mat = jnp.transpose(weight, (2, 3, 1, 0)).reshape(KKC, Cout) * scale[None, :]
    w_p = jnp.zeros((KKCp, Coutp), dtype=jnp.float32).at[:KKC, :Cout].set(w_mat)
    w_p = w_p.astype(compute_dtype)
    b_p = jnp.zeros((1, Coutp), dtype=jnp.float32).at[0, :Cout].set(bias)

    TH = _pick_tile_h(H, W, KKCp, Coutp)

    itemsize = jnp.dtype(compute_dtype).itemsize
    cost = pl.CostEstimate(
        flops=2 * N * H * W * KKCp * Coutp,
        transcendentals=0,
        bytes_accessed=(N * H * W * KKCp * itemsize      # im2col input
                        + KKCp * Coutp * itemsize        # weights
                        + Coutp * 4                      # bias
                        + N * H * W * Coutp * 4),        # output
    )

    kernel = functools.partial(_matmul_bias_relu_kernel,
                               TH=TH, W=W, KKCp=KKCp, Coutp=Coutp)

    out_p = pl.pallas_call(
        kernel,
        out_shape=jax.ShapeDtypeStruct((N, H, W, Coutp), jnp.float32),
        grid_spec=pltpu.PrefetchScalarGridSpec(
            num_scalar_prefetch=0,
            grid=(N, H // TH),
            in_specs=[
                pl.BlockSpec((1, TH, W, KKCp), lambda n, h: (n, h, 0, 0)),
                pl.BlockSpec((KKCp, Coutp), lambda n, h: (0, 0)),
                pl.BlockSpec((1, Coutp), lambda n, h: (0, 0)),
            ],
            out_specs=pl.BlockSpec((1, TH, W, Coutp), lambda n, h: (n, h, 0, 0)),
        ),
        compiler_params=pltpu.CompilerParams(
            dimension_semantics=("parallel", "parallel")),
        cost_estimate=cost,
    )(x_col, w_p, b_p)

    out = out_p[..., :Cout]                              # drop channel padding
    return jnp.transpose(out, (0, 3, 1, 2))              # back to NCHW


def _reference(x_nchw, weight, gamma, beta, running_mean, running_var, eps=1e-5):
    """Pure-JAX reference (NCHW conv + eval BN + ReLU)."""
    K = weight.shape[-1]
    p = (K - 1) // 2
    y = jax.lax.conv_general_dilated(
        x_nchw, weight, window_strides=(1, 1), padding=((p, p), (p, p)),
        dimension_numbers=("NCHW", "OIHW", "NCHW"))
    scale = gamma / jnp.sqrt(running_var + eps)
    bias = beta - running_mean * scale
    y = y * scale[None, :, None, None] + bias[None, :, None, None]
    return jnp.maximum(y, 0.0)


if __name__ == "__main__":
    key = jax.random.PRNGKey(0)
    N, Cin, Cout, H, W, K = 2, 4, 8, 16, 16, 3

    k_x, k_w, k_g, k_b, k_m, k_v = jax.random.split(key, 6)
    x = jax.random.normal(k_x, (N, Cin, H, W), dtype=jnp.float32)
    weight = jax.random.normal(k_w, (Cout, Cin, K, K), dtype=jnp.float32) * 0.1
    gamma = 1.0 + 0.1 * jax.random.normal(k_g, (Cout,), dtype=jnp.float32)
    beta = 0.1 * jax.random.normal(k_b, (Cout,), dtype=jnp.float32)
    running_mean = 0.05 * jax.random.normal(k_m, (Cout,), dtype=jnp.float32)
    running_var = 1.0 + 0.1 * jax.nn.softplus(
        jax.random.normal(k_v, (Cout,), dtype=jnp.float32))

    fwd = jax.jit(conv_bn_relu_2d)
    out = fwd(x, weight, gamma, beta, running_mean, running_var)
    out = jax.block_until_ready(out)

    ref = _reference(x, weight, gamma, beta, running_mean, running_var)
    assert out.shape == (N, Cout, H, W)
    assert jnp.allclose(out, ref, atol=1e-4, rtol=1e-4), "mismatch vs reference"

    print("KERNEL_OK")
</pallas_src>

<mosaic_0001>
module attributes {stable_mosaic.version = 11 : i64} {
  func.func @_matmul_bias_relu_kernel(%arg0: i32, %arg1: i32, %arg2: memref<1x8x16x128xf32, #tpu.memory_space<vmem>>, %arg3: memref<128x128xf32, #tpu.memory_space<vmem>>, %arg4: memref<1x128xf32, #tpu.memory_space<vmem>>, %arg5: memref<1x8x16x128xf32, #tpu.memory_space<vmem>>) attributes {dimension_semantics = [#tpu.dimension_semantics<parallel>, #tpu.dimension_semantics<parallel>], iteration_bounds = array<i64: 2, 2>, scalar_prefetch = 0 : i64, scratch_operands = 0 : i64, tpu.core_type = #tpu.core_type<tc>, window_params = [{transform_indices = @transform_0, window_bounds = array<i64: 1, 8, 16, 128>}, {pipeline_mode = #tpu.pipeline_mode<synchronous>, transform_indices = @transform_1, window_bounds = array<i64: 128, 128>}, {pipeline_mode = #tpu.pipeline_mode<synchronous>, transform_indices = @transform_2, window_bounds = array<i64: 1, 128>}, {transform_indices = @transform_3, window_bounds = array<i64: 1, 8, 16, 128>}]} {
    %c0 = arith.constant 0 : index
    %c0_0 = arith.constant 0 : index
    %c0_1 = arith.constant 0 : index
    %c0_2 = arith.constant 0 : index
    %0 = vector.load %arg2[%c0, %c0_0, %c0_1, %c0_2] : memref<1x8x16x128xf32, #tpu.memory_space<vmem>>, vector<1x8x16x128xf32>
    %1 = vector.shape_cast %0 : vector<1x8x16x128xf32> to vector<8x16x128xf32>
    %2 = vector.shape_cast %1 : vector<8x16x128xf32> to vector<128x128xf32>
    %c0_3 = arith.constant 0 : index
    %c0_4 = arith.constant 0 : index
    %3 = vector.load %arg3[%c0_3, %c0_4] : memref<128x128xf32, #tpu.memory_space<vmem>>, vector<128x128xf32>
    %cst = arith.constant dense<0.000000e+00> : vector<128x128xf32>
    %4 = tpu.matmul %2, %3, %cst {dimension_numbers = #tpu.dot_dimension_numbers<[1], [0], [0], [1], [0, 0, 1, 1], [], []>} : vector<128x128xf32>, vector<128x128xf32>, vector<128x128xf32> -> vector<128x128xf32>
    %c0_5 = arith.constant 0 : index
    %c0_6 = arith.constant 0 : index
    %5 = vector.load %arg4[%c0_5, %c0_6] : memref<1x128xf32, #tpu.memory_space<vmem>>, vector<1x128xf32>
    %6 = vector.broadcast %5 : vector<1x128xf32> to vector<128x128xf32>
    %7 = arith.addf %4, %6 : vector<128x128xf32>
    %cst_7 = arith.constant 0.000000e+00 : f32
    %8 = vector.broadcast %cst_7 : f32 to vector<128x128xf32>
    %9 = arith.maximumf %7, %8 : vector<128x128xf32>
    %10 = vector.shape_cast %9 : vector<128x128xf32> to vector<8x16x128xf32>
    %c0_8 = arith.constant 0 : index
    %c0_9 = arith.constant 0 : index
    %c0_10 = arith.constant 0 : index
    %c0_11 = arith.constant 0 : index
    %11 = vector.load %arg5[%c0_8, %c0_9, %c0_10, %c0_11] : memref<1x8x16x128xf32, #tpu.memory_space<vmem>>, vector<1x8x16x128xf32>
    %12 = vector.shape_cast %11 : vector<1x8x16x128xf32> to vector<8x16x128xf32>
    %13 = vector.shape_cast %10 : vector<8x16x128xf32> to vector<1x8x16x128xf32>
    tpu.vector_store %arg5[%c0_8, %c0_9, %c0_10, %c0_11], %13 {strides = array<i32>} : memref<1x8x16x128xf32, #tpu.memory_space<vmem>>, vector<1x8x16x128xf32>,
    return
  }
  func.func @transform_0(%arg0: i32, %arg1: i32) -> (i32, i32, i32, i32) {
    %c0_i32 = arith.constant 0 : i32
    %c0_i32_0 = arith.constant 0 : i32
    %c0_i32_1 = arith.constant 0 : i32
    return %arg0, %arg1, %c0_i32, %c0_i32_0 : i32, i32, i32, i32
  }
  func.func @transform_1(%arg0: i32, %arg1: i32) -> (i32, i32) {
    %c0_i32 = arith.constant 0 : i32
    %c0_i32_0 = arith.constant 0 : i32
    %c0_i32_1 = arith.constant 0 : i32
    return %c0_i32, %c0_i32_0 : i32, i32
  }
  func.func @transform_2(%arg0: i32, %arg1: i32) -> (i32, i32) {
    %c0_i32 = arith.constant 0 : i32
    %c0_i32_0 = arith.constant 0 : i32
    %c0_i32_1 = arith.constant 0 : i32
    return %c0_i32, %c0_i32_0 : i32, i32
  }
  func.func @transform_3(%arg0: i32, %arg1: i32) -> (i32, i32, i32, i32) {
    %c0_i32 = arith.constant 0 : i32
    %c0_i32_0 = arith.constant 0 : i32
    %c0_i32_1 = arith.constant 0 : i32
    return %arg0, %arg1, %c0_i32, %c0_i32_0 : i32, i32, i32, i32
  }
}

</mosaic_0001>

<bundles_post_ra>
// kernel: conv_bn_relu_2d.1
= control target key start
LH: loop header
LB: loop body
LE: loop exit
PB: predicated region body
PF: predicated region fallthrough
CT: control target
= control target key end

     0   :  { %s611_s12 = smov 0   ;;  %s613_s13 = smov 0   ;;  %s763_s0 = inlined_call_operand.vmem [shape: f32[2,16,16,128], index: 0, kind: input, shape index: {}]   ;;  %s764_s1 = inlined_call_operand.vmem [shape: f32[128,128], index: 1, kind: input, shape index: {}]   ;;  %s765_s2 = inlined_call_operand.vmem [shape: f32[1,128], index: 2, kind: input, shape index: {}]   ;;  %s766_s3 = inlined_call_operand.vmem [shape: f32[2,16,16,128], index: 3, kind: output, shape index: {}]  }
   0x1   :  { %s615_s14 = smov 0   ;;  %s617_s15 = smov 0  }
   0x2   :  { %s619_s16 = smov 0  }
   0x3 LB: > { %s22_s17 = sadd.s32 1, %s581_s14  ;;  %s25_s18 = sadd.s32 1, %s585_s15  ;;  %s589_s16 = sphi %s619_s16, %s13_s16   ;;  %s585_s15 = sphi %s617_s15, %s770_s15   ;;  %s581_s14 = sphi %s615_s14, %s769_s14   ;;  %s577_s13 = sphi %s613_s13, %s768_s13   ;;  %s573_s12 = sphi %s611_s12, %s767_s12  }
   0x4   : > { %p23_p0 = scmp.ge.s32.totalorder %s22_s17, 2  ;;  %p451_p1 = scmp.ge.s32.totalorder %s589_s16, 1 }
   0x5   : > { %p159_p2 = scmp.lt.s32.totalorder %s589_s16, 5 }
   0x6   : > { %s772_s17 = smov (%p23_p0, %s22_s17), 0  ;;  %s774_s18 = smov (!%p23_p0, %s25_s18), %s585_s15 }
   0x7   : > { %p160_p3 = pnand %p451_p1, %p159_p2  ;;  %p27_p4 = scmp.ge.s32.totalorder %s774_s18, 2 }
   0x8   : > { %s452_s29 = sshll.u32 (!%p160_p3), %s573_s12, 3  ;;  %p194_p5 = scmp.lt.s32.totalorder (!%p160_p3), %s577_s13, 1 }
   0x9   : > { %s776_s18 = smov (%p27_p4, %s774_s18), 0  ;;  %163 = sbr.rel (%p160_p3) target bundleno = 208 (0xd0), region = 32 }
   0xa   : > { %p196_p6 = scmp.lt.s32.totalorder (!%p160_p3), %s452_s29, 15 }
   0xe   : > { %v246_v0 = vld [vmem:[%s764_s1 + $0x78] sm:$0xff]  ;;  %v245_v1 = vld [vmem:[%s764_s1 + $0x70] sm:$0xff]  ;;  %v244_v2 = vld [vmem:[%s764_s1 + $0x68] sm:$0xff]  ;;  %s778_s13 = smov (!%p194_p5, %s577_s13), 1  ;;  %s780_s29 = smov (!%p196_p6, %s452_s29), 15 }
   0xf   : > { %463 = vmatpush.msra.mxu2 %v246_v0  ;;  %464 = vmatpush.msra.mxu3 %v246_v0  ;;  %v243_v3 = vld [vmem:[%s764_s1 + $0x60] sm:$0xff]  ;;  %v242_v4 = vld [vmem:[%s764_s1 + $0x58] sm:$0xff]  ;;  %v241_v5 = vld [vmem:[%s764_s1 + $0x50] sm:$0xff]  ;;  %s453_s19 = sshll.u32 %s780_s29, 1  ;;  %s454_s20 = sshll.u32 %s778_s13, 5 }
  0x10   : > { %251 = vmatpush.msra.mxu0 %v246_v0  ;;  %462 = vmatpush.msra.mxu1 %v246_v0  ;;  %v240_v6 = vld [vmem:[%s764_s1 + $0x48] sm:$0xff]  ;;  %v239_v7 = vld [vmem:[%s764_s1 + $0x40] sm:$0xff]  ;;  %v238_v8 = vld [vmem:[%s764_s1 + $0x38] sm:$0xff]  ;;  %s684_s25 = sadd.s32 %s454_s20, %s453_s19 }
  0x11   : > { %466 = vmatpush.msra.mxu2 %v245_v1  ;;  %467 = vmatpush.msra.mxu3 %v245_v1  ;;  %v237_v9 = vld [vmem:[%s764_s1 + $0x30] sm:$0xff]  ;;  %v236_v10 = vld [vmem:[%s764_s1 + $0x28] sm:$0xff]  ;;  %v235_v11 = vld [vmem:[%s764_s1 + $0x20] sm:$0xff]  ;;  %s455_s27 = sshll.u32 %s684_s25, 3 }
  0x12   : > { %252 = vmatpush.msra.mxu0 %v245_v1  ;;  %465 = vmatpush.msra.mxu1 %v245_v1  ;;  %v234_v12 = vld [vmem:[%s764_s1 + $0x18] sm:$0xff]  ;;  %v233_v13 = vld [vmem:[%s764_s1 + $0x10] sm:$0xff]  ;;  %v232_v14 = vld [vmem:[%s764_s1 + $0x8] sm:$0xff]  ;;  %s701_s7 = scalar_lea.vmem %s763_s0, %s455_s27  ;;  %s730_s20 = scalar_lea.vmem %s766_s3, %s455_s27 }
  0x13   : > { %469 = vmatpush.msra.mxu2 %v244_v2  ;;  %470 = vmatpush.msra.mxu3 %v244_v2  ;;  %v231_v15 = vld [vmem:[%s764_s1] sm:$0xff]  ;;  %v224_v20 = vld [vmem:[%s701_s7 + $0x48] sm:$0xff]  ;;  %v225_v24 = vld [vmem:[%s701_s7 + $0x50] sm:$0xff] }
  0x14   : > { %253 = vmatpush.msra.mxu0 %v244_v2  ;;  %468 = vmatpush.msra.mxu1 %v244_v2  ;;  %v223_v16 = vld [vmem:[%s701_s7 + $0x40] sm:$0xff]  ;;  %v228_v21 = vld [vmem:[%s701_s7 + $0x68] sm:$0xff]  ;;  %v229_v25 = vld [vmem:[%s701_s7 + $0x70] sm:$0xff] }
  0x15   : > { %472 = vmatpush.msra.mxu2 %v243_v3  ;;  %473 = vmatpush.msra.mxu3 %v243_v3  ;;  %v227_v17 = vld [vmem:[%s701_s7 + $0x60] sm:$0xff]  ;;  %v216_v22 = vld [vmem:[%s701_s7 + $0x8] sm:$0xff]  ;;  %v217_v26 = vld [vmem:[%s701_s7 + $0x10] sm:$0xff] }
  0x16   : > { %254 = vmatpush.msra.mxu0 %v243_v3  ;;  %471 = vmatpush.msra.mxu1 %v243_v3  ;;  %v215_v18 = vld [vmem:[%s701_s7] sm:$0xff]  ;;  %v220_v23 = vld [vmem:[%s701_s7 + $0x28] sm:$0xff]  ;;  %v221_v27 = vld [vmem:[%s701_s7 + $0x30] sm:$0xff] }
  0x17   : > { %475 = vmatpush.msra.mxu2 %v242_v4  ;;  %476 = vmatpush.msra.mxu3 %v242_v4  ;;  %v219_v19 = vld [vmem:[%s701_s7 + $0x20] sm:$0xff]  ;;  %v226_v28 = vld [vmem:[%s701_s7 + $0x58] sm:$0xff] }
  0x18   : > { %255 = vmatpush.msra.mxu0 %v242_v4  ;;  %474 = vmatpush.msra.mxu1 %v242_v4  ;;  %v230_v29 = vld [vmem:[%s701_s7 + $0x78] sm:$0xff]  ;;  %v550_v32 = vld [vmem:[%s765_s2] ss:$0 sm:$0xff] }
  0x19   : > { %478 = vmatpush.msra.mxu2 %v241_v5  ;;  %479 = vmatpush.msra.mxu3 %v241_v5  ;;  %v218_v30 = vld [vmem:[%s701_s7 + $0x18] sm:$0xff] }
  0x1a   : > { %256 = vmatpush.msra.mxu0 %v241_v5  ;;  %477 = vmatpush.msra.mxu1 %v241_v5  ;;  %v222_v31 = vld [vmem:[%s701_s7 + $0x38] sm:$0xff] }
  0x1b   : > { %481 = vmatpush.msra.mxu2 %v240_v6  ;;  %482 = vmatpush.msra.mxu3 %v240_v6 }
  0x1c   : > { %257 = vmatpush.msra.mxu0 %v240_v6  ;;  %480 = vmatpush.msra.mxu1 %v240_v6 }
  0x1d   : > { %484 = vmatpush.msra.mxu2 %v239_v7  ;;  %485 = vmatpush.msra.mxu3 %v239_v7 }
  0x1e   : > { %258 = vmatpush.msra.mxu0 %v239_v7  ;;  %483 = vmatpush.msra.mxu1 %v239_v7 }
  0x1f   : > { %487 = vmatpush.msra.mxu2 %v238_v8  ;;  %488 = vmatpush.msra.mxu3 %v238_v8 }
  0x20   : > { %259 = vmatpush.msra.mxu0 %v238_v8  ;;  %486 = vmatpush.msra.mxu1 %v238_v8 }
  0x21   : > { %490 = vmatpush.msra.mxu2 %v237_v9  ;;  %491 = vmatpush.msra.mxu3 %v237_v9 }
  0x22   : > { %260 = vmatpush.msra.mxu0 %v237_v9  ;;  %489 = vmatpush.msra.mxu1 %v237_v9 }
  0x23   : > { %493 = vmatpush.msra.mxu2 %v236_v10  ;;  %494 = vmatpush.msra.mxu3 %v236_v10 }
  0x24   : > { %261 = vmatpush.msra.mxu0 %v236_v10  ;;  %492 = vmatpush.msra.mxu1 %v236_v10 }
  0x25   : > { %496 = vmatpush.msra.mxu2 %v235_v11  ;;  %497 = vmatpush.msra.mxu3 %v235_v11 }
  0x26   : > { %262 = vmatpush.msra.mxu0 %v235_v11  ;;  %495 = vmatpush.msra.mxu1 %v235_v11 }
  0x27   : > { %499 = vmatpush.msra.mxu2 %v234_v12  ;;  %500 = vmatpush.msra.mxu3 %v234_v12 }
  0x28   : > { %263 = vmatpush.msra.mxu0 %v234_v12  ;;  %498 = vmatpush.msra.mxu1 %v234_v12 }
  0x29   : > { %502 = vmatpush.msra.mxu2 %v233_v13  ;;  %503 = vmatpush.msra.mxu3 %v233_v13 }
  0x2a   : > { %264 = vmatpush.msra.mxu0 %v233_v13  ;;  %501 = vmatpush.msra.mxu1 %v233_v13 }
  0x2b   : > { %505 = vmatpush.msra.mxu2 %v232_v14  ;;  %506 = vmatpush.msra.mxu3 %v232_v14 }
  0x2c   : > { %265 = vmatpush.msra.mxu0 %v232_v14  ;;  %504 = vmatpush.msra.mxu1 %v232_v14 }
  0x2d   : > { %508 = vmatpush.msra.mxu2 %v231_v15  ;;  %509 = vmatpush.msra.mxu3 %v231_v15 }
  0x2e   : > { %291 = vmatmul.f32.vlgmr.msra.gmra.mxu2 %v223_v16  ;;  %303 = vmatmul.f32.vlgmr.msra.gmra.mxu3 %v227_v17 }
  0x2f   : > { %266 = vmatpush.msra.mxu0 %v231_v15  ;;  %507 = vmatpush.msra.mxu1 %v231_v15 }
  0x30   : > { %267 = vmatmul.f32.vlgmr.msra.gmra.mxu0 %v215_v18  ;;  %279 = vmatmul.f32.vlgmr.msra.gmra.mxu1 %v219_v19 }
  0x36   : > { %294 = vmatmul.f32.gmra.mxu2 %v224_v20  ;;  %306 = vmatmul.f32.gmra.mxu3 %v228_v21 }
  0x38   : > { %270 = vmatmul.f32.gmra.mxu0 %v216_v22  ;;  %282 = vmatmul.f32.gmra.mxu1 %v220_v23 }
  0x3e   : > { %297 = vmatmul.f32.gmra.mxu2 %v225_v24  ;;  %309 = vmatmul.f32.gmra.mxu3 %v229_v25 }
  0x40   : > { %273 = vmatmul.f32.gmra.mxu0 %v217_v26  ;;  %285 = vmatmul.f32.gmra.mxu1 %v221_v27 }
  0x46   : > { %300 = vmatmul.f32.gmra.mxu2 %v226_v28  ;;  %312 = vmatmul.f32.gmra.mxu3 %v230_v29 }
  0x48   : > { %276 = vmatmul.f32.gmra.mxu0 %v218_v30  ;;  %288 = vmatmul.f32.gmra.mxu1 %v222_v31 }
  0xad   : > { %v268_v33 = vpop.f32.mrf.mxu0  ;;  %v280_v34 = vpop.f32.mrf.mxu1 }
  0xae   : > { %v269_v35 = vadd.f32 %v550_v32, %v268_v33  ;;  %v281_v36 = vadd.f32 %v550_v32, %v280_v34 }
  0xb0   : > { %v316_v37 = vmax.f32 %v269_v35, 0.0  ;;  %v320_v38 = vmax.f32 %v281_v36, 0.0 }
  0xb1   : > { %v292_v39 = vpop.f32.mrf.mxu2  ;;  %v304_v40 = vpop.f32.mrf.mxu3 }
  0xb2   : > { %332 = vst [vmem:[%s730_s20] sm:$0xff] %v316_v37  ;;  %v293_v41 = vadd.f32 %v550_v32, %v292_v39  ;;  %v305_v42 = vadd.f32 %v550_v32, %v304_v40 }
  0xb3   : > { %336 = vst [vmem:[%s730_s20 + $0x20] sm:$0xff] %v320_v38 }
  0xb4   : > { %v324_v43 = vmax.f32 %v293_v41, 0.0  ;;  %v328_v44 = vmax.f32 %v305_v42, 0.0 }
  0xb5   : > { %v271_v45 = vpop.f32.mrf.mxu0  ;;  %v283_v46 = vpop.f32.mrf.mxu1 }
  0xb6   : > { %340 = vst [vmem:[%s730_s20 + $0x40] sm:$0xff] %v324_v43  ;;  %v272_v47 = vadd.f32 %v550_v32, %v271_v45  ;;  %v284_v48 = vadd.f32 %v550_v32, %v283_v46 }
  0xb7   : > { %344 = vst [vmem:[%s730_s20 + $0x60] sm:$0xff] %v328_v44 }
  0xb8   : > { %v317_v49 = vmax.f32 %v272_v47, 0.0  ;;  %v321_v50 = vmax.f32 %v284_v48, 0.0 }
  0xb9   : > { %v295_v51 = vpop.f32.mrf.mxu2  ;;  %v307_v52 = vpop.f32.mrf.mxu3 }
  0xba   : > { %333 = vst [vmem:[%s730_s20 + $0x8] sm:$0xff] %v317_v49  ;;  %v296_v53 = vadd.f32 %v550_v32, %v295_v51  ;;  %v308_v54 = vadd.f32 %v550_v32, %v307_v52 }
  0xbb   : > { %337 = vst [vmem:[%s730_s20 + $0x28] sm:$0xff] %v321_v50 }
  0xbc   : > { %v325_v55 = vmax.f32 %v296_v53, 0.0  ;;  %v329_v56 = vmax.f32 %v308_v54, 0.0 }
  0xbd   : > { %v274_v57 = vpop.f32.mrf.mxu0  ;;  %v286_v58 = vpop.f32.mrf.mxu1 }
  0xbe   : > { %341 = vst [vmem:[%s730_s20 + $0x48] sm:$0xff] %v325_v55  ;;  %v275_v59 = vadd.f32 %v550_v32, %v274_v57  ;;  %v287_v60 = vadd.f32 %v550_v32, %v286_v58 }
  0xbf   : > { %345 = vst [vmem:[%s730_s20 + $0x68] sm:$0xff] %v329_v56 }
  0xc0   : > { %v318_v61 = vmax.f32 %v275_v59, 0.0  ;;  %v322_v62 = vmax.f32 %v287_v60, 0.0 }
  0xc1   : > { %v298_v63 = vpop.f32.mrf.mxu2  ;;  %v310_v0 = vpop.f32.mrf.mxu3 }
  0xc2   : > { %334 = vst [vmem:[%s730_s20 + $0x10] sm:$0xff] %v318_v61  ;;  %v299_v1 = vadd.f32 %v550_v32, %v298_v63  ;;  %v311_v2 = vadd.f32 %v550_v32, %v310_v0 }
  0xc3   : > { %338 = vst [vmem:[%s730_s20 + $0x30] sm:$0xff] %v322_v62 }
  0xc4   : > { %v326_v3 = vmax.f32 %v299_v1, 0.0  ;;  %v330_v4 = vmax.f32 %v311_v2, 0.0 }
  0xc5   : > { %v277_v5 = vpop.f32.mrf.mxu0  ;;  %v289_v6 = vpop.f32.mrf.mxu1 }
  0xc6   : > { %342 = vst [vmem:[%s730_s20 + $0x50] sm:$0xff] %v326_v3  ;;  %v278_v7 = vadd.f32 %v550_v32, %v277_v5  ;;  %v290_v8 = vadd.f32 %v550_v32, %v289_v6 }
  0xc7   : > { %346 = vst [vmem:[%s730_s20 + $0x70] sm:$0xff] %v330_v4 }
  0xc8   : > { %v319_v9 = vmax.f32 %v278_v7, 0.0  ;;  %v323_v10 = vmax.f32 %v290_v8, 0.0 }
  0xc9   : > { %v301_v11 = vpop.f32.mrf.mxu2  ;;  %v313_v12 = vpop.f32.mrf.mxu3 }
  0xca   : > { %335 = vst [vmem:[%s730_s20 + $0x18] sm:$0xff] %v319_v9  ;;  %v302_v13 = vadd.f32 %v550_v32, %v301_v11  ;;  %v314_v14 = vadd.f32 %v550_v32, %v313_v12 }
  0xcb   : > { %339 = vst [vmem:[%s730_s20 + $0x38] sm:$0xff] %v323_v10 }
  0xcc   : > { %v327_v15 = vmax.f32 %v302_v13, 0.0  ;;  %v331_v16 = vmax.f32 %v314_v14, 0.0 }
  0xce   : > { %343 = vst [vmem:[%s730_s20 + $0x58] sm:$0xff] %v327_v15 }
  0xcf   : > { %347 = vst [vmem:[%s730_s20 + $0x78] sm:$0xff] %v331_v16 }
  0xd0 PF: > { %s13_s16 = sadd.s32 1, %s589_s16   ;;  %s767_s12 = smov %s581_s14 }
  0xd1   : > { %p10_p7 = scmp.ge.s32.totalorder %s13_s16, 6   ;;  %s768_s13 = smov %s585_s15 }
  0xd2   : > { %s769_s14 = smov %s772_s17  ;;  %s770_s15 = smov %s776_s18 }
  0xd3   :  { %12 = sbr.rel (!%p10_p7) target bundleno = 3 (0x3), region = 62 }

</bundles_post_ra>
